<compile_context>
chip_gen: v5e
topology: v5e:2x2
jax: 0.10.0
libtpu: 0.0.40
codegen_flags: <defaults>
</compile_context>

<pallas_src>
import jax
import jax.numpy as jnp
from jax.experimental import pallas as pl
from jax.experimental.pallas import tpu as pltpu

_LANES = 128
_SUBLANES = 8


def _make_dice_stats_kernel(C, trows, acc_rows, keep_es, approx_recip):
    """Per-tile kernel: accumulates per-channel (inter, psum, gsum) partials.

    acc_ref block: (1, 3*C, acc_rows, 128); resident across the row-tile axis
    and private to the current batch element (batch axis is parallel-safe).
    """

    def _row_reduce(plane):
        # (trows, 128) -> (acc_rows, 128).  When trows is a multiple of 8 this
        # is a pure-VALU partial reduce (no cross-sublane XLU work).
        if acc_rows == _SUBLANES:
            return jnp.sum(
                plane.reshape(trows // _SUBLANES, _SUBLANES, _LANES), axis=0)
        return jnp.sum(plane, axis=0, keepdims=True)

    def kernel(x_ref, g_ref, acc_ref):
        r = pl.program_id(1)

        @pl.when(r == 0)
        def _():
            acc_ref[...] = jnp.zeros_like(acc_ref)

        # ---- channel max, sliced per channel straight from the ref ----------
        m = x_ref[0, 0].astype(jnp.float32)
        for c in range(1, C):
            m = jnp.maximum(m, x_ref[0, c].astype(jnp.float32))

        # ---- softmax denominator (keep exp planes live only for small C) ----
        es = []
        z = None
        for c in range(C):
            e = jnp.exp(x_ref[0, c].astype(jnp.float32) - m)
            if keep_es:
                es.append(e)
            z = e if z is None else z + e
        # one reciprocal per pixel instead of a divide per (pixel, channel)
        inv = pl.reciprocal(z, approx=approx_recip)

        # ---- per-channel partial reductions, accumulated in place -----------
        for c in range(C):
            if keep_es:
                p = es[c] * inv
            else:
                # recompute exp (EUP has slack) so temporaries stay ~constant
                p = jnp.exp(x_ref[0, c].astype(jnp.float32) - m) * inv
            gc = g_ref[0, c].astype(jnp.float32)
            acc_ref[0, c] += _row_reduce(p * gc)        # intersection
            acc_ref[0, C + c] += _row_reduce(p)         # sum(p)   (pad-corrected later)
            acc_ref[0, 2 * C + c] += _row_reduce(gc)    # sum(g)

    return kernel


def _select_tiling(T, C, x_bytes, g_bytes, vmem_budget_bytes):
    """Pick (trows, R_pad): row-tile (multiple of 8 or the full row count)."""
    R = -(-T // _LANES)                       # rows of 128 lanes (ceil)
    lane_aligned = (T % _LANES == 0)

    # VMEM per row of tile: 2 double-buffered inputs + f32 in-kernel temps.
    temp_planes = min(C, 8) + 4
    per_row = (2 * C * _LANES * (x_bytes + g_bytes)
               + temp_planes * _LANES * 4)
    target = vmem_budget_bytes // per_row
    target = max(_SUBLANES, min(1024, (target // _SUBLANES) * _SUBLANES))

    if R <= target:
        return R, R                           # single full-extent row tile

    # Prefer a multiple-of-8 divisor of R (no HBM padding copy needed).
    best = 0
    if lane_aligned:
        d = target
        while d >= _SUBLANES:
            if R % d == 0:
                best = d
                break
            d -= _SUBLANES
    if best >= max(64, target // 4):
        return best, R

    # Fall back to padding (corrected analytically in the epilogue).
    trows = target
    R_pad = -(-R // trows) * trows
    return trows, R_pad


def dice_loss_multiple(ipts, gt, smooth=1.0, *, vmem_budget_bytes=12 << 20,
                       approx_reciprocal=False):
    """Pallas implementation of DiceLoss_multiple.forward(ipts, gt)."""
    N, C, H, W = ipts.shape
    T = H * W

    trows, R_pad = _select_tiling(T, C, ipts.dtype.itemsize, gt.dtype.itemsize,
                                  vmem_budget_bytes)
    pad = R_pad * _LANES - T

    # Keep original dtypes: no f32 upcast copies in HBM.
    x = ipts.reshape(N, C, T)
    g = gt.reshape(N, C, T)
    if pad:
        # Zero padding: padded logits softmax to exactly 1/C per channel and
        # are corrected analytically in the epilogue; gt padding adds zero.
        x = jnp.pad(x, ((0, 0), (0, 0), (0, pad)))
        g = jnp.pad(g, ((0, 0), (0, 0), (0, pad)))
    x = x.reshape(N, C, R_pad, _LANES)
    g = g.reshape(N, C, R_pad, _LANES)

    acc_rows = _SUBLANES if (trows % _SUBLANES == 0) else 1
    keep_es = C <= 8
    grid = (N, R_pad // trows)

    kernel = _make_dice_stats_kernel(C, trows, acc_rows, keep_es,
                                     approx_reciprocal)

    acc = pl.pallas_call(
        kernel,
        out_shape=jax.ShapeDtypeStruct((N, 3 * C, acc_rows, _LANES),
                                       jnp.float32),
        grid_spec=pltpu.PrefetchScalarGridSpec(
            num_scalar_prefetch=0,
            grid=grid,
            in_specs=[
                pl.BlockSpec((1, C, trows, _LANES), lambda n, r: (n, 0, r, 0)),
                pl.BlockSpec((1, C, trows, _LANES), lambda n, r: (n, 0, r, 0)),
            ],
            # per-batch lane-dense accumulator -> batch axis is safe to run on
            # both v7x TensorCores; resident across the row-tile axis.
            out_specs=pl.BlockSpec((1, 3 * C, acc_rows, _LANES),
                                   lambda n, r: (n, 0, 0, 0)),
        ),
        compiler_params=pltpu.CompilerParams(
            dimension_semantics=("parallel", "arbitrary"),
            vmem_limit_bytes=32 * 1024 * 1024),
    )(x, g)

    # Tiny epilogue: reduce batch/sublane/lane partials, correct padding,
    # form per-channel dice, average.
    sums = jnp.sum(acc, axis=(0, 2, 3))        # (3C,)
    inter = sums[:C]
    psum = sums[C:2 * C]
    gsum = sums[2 * C:]
    if pad:
        psum = psum - (N * pad) / C            # padded pixels softmax to 1/C
    dice = (2.0 * inter + smooth) / (psum + gsum + smooth)
    return jnp.mean(1.0 - dice)


def _reference(ipts, gt, smooth=1.0):
    """Pure-JAX reference matching the PyTorch module exactly."""
    p = jax.nn.softmax(ipts, axis=1)
    c = ipts.shape[1]
    losses = []
    for i in range(c):
        pi = p[:, i]
        gi = gt[:, i]
        inter = jnp.sum(pi * gi)
        dice = (2.0 * inter + smooth) / (jnp.sum(pi) + jnp.sum(gi) + smooth)
        losses.append(1.0 - dice)
    return sum(losses) / c


def _make_inputs(key, N, C, H, W):
    k1, k2 = jax.random.split(key)
    ipts = jax.random.normal(k1, (N, C, H, W), dtype=jnp.float32)
    labels = jax.random.randint(k2, (N, H, W), 0, C)
    gt = jax.nn.one_hot(labels, C, dtype=jnp.float32)       # (N, H, W, C)
    gt = jnp.transpose(gt, (0, 3, 1, 2))                    # (N, C, H, W)
    return ipts, gt


if __name__ == "__main__":
    key = jax.random.PRNGKey(0)
    k1, k2, k3 = jax.random.split(key, 3)

    # 1) small lane-aligned case (single full-extent tile, no padding)
    ipts, gt = _make_inputs(k1, 2, 4, 16, 16)
    loss = jax.block_until_ready(dice_loss_multiple(ipts, gt))
    ref = _reference(ipts, gt)
    assert jnp.allclose(loss, ref, atol=1e-5, rtol=1e-5), (loss, ref)

    # 2) non-lane-aligned case (padding + analytic 1/C correction, C=3)
    ipts, gt = _make_inputs(k2, 2, 3, 10, 12)
    loss = jax.block_until_ready(dice_loss_multiple(ipts, gt))
    ref = _reference(ipts, gt)
    assert jnp.allclose(loss, ref, atol=1e-5, rtol=1e-5), (loss, ref)

    # 3) multi-tile case with a tiny forced VMEM budget: exercises the padded
    #    multi-row-tile path, the (trows//8, 8, 128) VPU partial reduce and the
    #    per-batch parallel accumulator.
    ipts, gt = _make_inputs(k3, 2, 4, 64, 64)
    loss = jax.block_until_ready(
        dice_loss_multiple(ipts, gt, vmem_budget_bytes=300_000))
    ref = _reference(ipts, gt)
    assert jnp.allclose(loss, ref, atol=1e-5, rtol=1e-5), (loss, ref)

    print("KERNEL_OK")
</pallas_src>

<mosaic_0001>
module attributes {stable_mosaic.version = 11 : i64} {
  func.func @kernel(%arg0: i32, %arg1: i32, %arg2: memref<1x4x2x128xf32, #tpu.memory_space<vmem>>, %arg3: memref<1x4x2x128xf32, #tpu.memory_space<vmem>>, %arg4: memref<1x12x1x128xf32, #tpu.memory_space<vmem>>) attributes {dimension_semantics = [#tpu.dimension_semantics<parallel>, #tpu.dimension_semantics<arbitrary>], iteration_bounds = array<i64: 2, 1>, scalar_prefetch = 0 : i64, scratch_operands = 0 : i64, tpu.core_type = #tpu.core_type<tc>, window_params = [{transform_indices = @transform_0, window_bounds = array<i64: 1, 4, 2, 128>}, {transform_indices = @transform_1, window_bounds = array<i64: 1, 4, 2, 128>}, {transform_indices = @transform_2, window_bounds = array<i64: 1, 12, 1, 128>}]} {
    %c0_i32 = arith.constant 0 : i32
    %0 = arith.cmpi eq, %arg1, %c0_i32 : i32
    %1 = arith.extui %0 : i1 to i32
    %c0_i32_0 = arith.constant 0 : i32
    %2 = arith.cmpi ne, %1, %c0_i32_0 : i32
    scf.if %2 {
      %cst_144 = arith.constant 0.000000e+00 : f32
      %146 = vector.broadcast %cst_144 : f32 to vector<1x12x1x128xf32>
      %c0_145 = arith.constant 0 : index
      %c0_146 = arith.constant 0 : index
      %c0_147 = arith.constant 0 : index
      %c0_148 = arith.constant 0 : index
      %147 = vector.load %arg4[%c0_145, %c0_146, %c0_147, %c0_148] : memref<1x12x1x128xf32, #tpu.memory_space<vmem>>, vector<1x12x1x128xf32>
      tpu.vector_store %arg4[%c0_145, %c0_146, %c0_147, %c0_148], %146 {strides = array<i32>} : memref<1x12x1x128xf32, #tpu.memory_space<vmem>>, vector<1x12x1x128xf32>,
    } else {
    }
    %c0 = arith.constant 0 : index
    %c0_1 = arith.constant 0 : index
    %c0_2 = arith.constant 0 : index
    %c0_3 = arith.constant 0 : index
    %3 = vector.load %arg2[%c0, %c0_1, %c0_2, %c0_3] : memref<1x4x2x128xf32, #tpu.memory_space<vmem>>, vector<1x1x2x128xf32>
    %4 = vector.shape_cast %3 : vector<1x1x2x128xf32> to vector<2x128xf32>
    %c0_4 = arith.constant 0 : index
    %c1 = arith.constant 1 : index
    %c0_5 = arith.constant 0 : index
    %c0_6 = arith.constant 0 : index
    %5 = vector.load %arg2[%c0_4, %c1, %c0_5, %c0_6] : memref<1x4x2x128xf32, #tpu.memory_space<vmem>>, vector<1x1x2x128xf32>
    %6 = vector.shape_cast %5 : vector<1x1x2x128xf32> to vector<2x128xf32>
    %7 = arith.maximumf %4, %6 : vector<2x128xf32>
    %c0_7 = arith.constant 0 : index
    %c2 = arith.constant 2 : index
    %c0_8 = arith.constant 0 : index
    %c0_9 = arith.constant 0 : index
    %8 = vector.load %arg2[%c0_7, %c2, %c0_8, %c0_9] : memref<1x4x2x128xf32, #tpu.memory_space<vmem>>, vector<1x1x2x128xf32>
    %9 = vector.shape_cast %8 : vector<1x1x2x128xf32> to vector<2x128xf32>
    %10 = arith.maximumf %7, %9 : vector<2x128xf32>
    %c0_10 = arith.constant 0 : index
    %c3 = arith.constant 3 : index
    %c0_11 = arith.constant 0 : index
    %c0_12 = arith.constant 0 : index
    %11 = vector.load %arg2[%c0_10, %c3, %c0_11, %c0_12] : memref<1x4x2x128xf32, #tpu.memory_space<vmem>>, vector<1x1x2x128xf32>
    %12 = vector.shape_cast %11 : vector<1x1x2x128xf32> to vector<2x128xf32>
    %13 = arith.maximumf %10, %12 : vector<2x128xf32>
    %c0_13 = arith.constant 0 : index
    %c0_14 = arith.constant 0 : index
    %c0_15 = arith.constant 0 : index
    %c0_16 = arith.constant 0 : index
    %14 = vector.load %arg2[%c0_13, %c0_14, %c0_15, %c0_16] : memref<1x4x2x128xf32, #tpu.memory_space<vmem>>, vector<1x1x2x128xf32>
    %15 = vector.shape_cast %14 : vector<1x1x2x128xf32> to vector<2x128xf32>
    %16 = arith.subf %15, %13 : vector<2x128xf32>
    %17 = math.exp %16 : vector<2x128xf32>
    %c0_17 = arith.constant 0 : index
    %c1_18 = arith.constant 1 : index
    %c0_19 = arith.constant 0 : index
    %c0_20 = arith.constant 0 : index
    %18 = vector.load %arg2[%c0_17, %c1_18, %c0_19, %c0_20] : memref<1x4x2x128xf32, #tpu.memory_space<vmem>>, vector<1x1x2x128xf32>
    %19 = vector.shape_cast %18 : vector<1x1x2x128xf32> to vector<2x128xf32>
    %20 = arith.subf %19, %13 : vector<2x128xf32>
    %21 = math.exp %20 : vector<2x128xf32>
    %22 = arith.addf %17, %21 : vector<2x128xf32>
    %c0_21 = arith.constant 0 : index
    %c2_22 = arith.constant 2 : index
    %c0_23 = arith.constant 0 : index
    %c0_24 = arith.constant 0 : index
    %23 = vector.load %arg2[%c0_21, %c2_22, %c0_23, %c0_24] : memref<1x4x2x128xf32, #tpu.memory_space<vmem>>, vector<1x1x2x128xf32>
    %24 = vector.shape_cast %23 : vector<1x1x2x128xf32> to vector<2x128xf32>
    %25 = arith.subf %24, %13 : vector<2x128xf32>
    %26 = math.exp %25 : vector<2x128xf32>
    %27 = arith.addf %22, %26 : vector<2x128xf32>
    %c0_25 = arith.constant 0 : index
    %c3_26 = arith.constant 3 : index
    %c0_27 = arith.constant 0 : index
    %c0_28 = arith.constant 0 : index
    %28 = vector.load %arg2[%c0_25, %c3_26, %c0_27, %c0_28] : memref<1x4x2x128xf32, #tpu.memory_space<vmem>>, vector<1x1x2x128xf32>
    %29 = vector.shape_cast %28 : vector<1x1x2x128xf32> to vector<2x128xf32>
    %30 = arith.subf %29, %13 : vector<2x128xf32>
    %31 = math.exp %30 : vector<2x128xf32>
    %32 = arith.addf %27, %31 : vector<2x128xf32>
    %33 = tpu.reciprocal %32 : vector<2x128xf32> -> vector<2x128xf32>
    %34 = arith.mulf %17, %33 : vector<2x128xf32>
    %c0_29 = arith.constant 0 : index
    %c0_30 = arith.constant 0 : index
    %c0_31 = arith.constant 0 : index
    %c0_32 = arith.constant 0 : index
    %35 = vector.load %arg3[%c0_29, %c0_30, %c0_31, %c0_32] : memref<1x4x2x128xf32, #tpu.memory_space<vmem>>, vector<1x1x2x128xf32>
    %36 = vector.shape_cast %35 : vector<1x1x2x128xf32> to vector<2x128xf32>
    %c0_33 = arith.constant 0 : index
    %c0_34 = arith.constant 0 : index
    %c0_35 = arith.constant 0 : index
    %c0_36 = arith.constant 0 : index
    %37 = vector.load %arg4[%c0_33, %c0_34, %c0_35, %c0_36] : memref<1x12x1x128xf32, #tpu.memory_space<vmem>>, vector<1x1x1x128xf32>
    %38 = vector.shape_cast %37 : vector<1x1x1x128xf32> to vector<1x128xf32>
    %39 = arith.mulf %34, %36 : vector<2x128xf32>
    %cst = arith.constant dense<0.000000e+00> : vector<128xf32>
    %40 = vector.multi_reduction <add>, %39, %cst [0] : vector<2x128xf32> to vector<128xf32>
    %41 = vector.shape_cast %40 : vector<128xf32> to vector<1x128xf32>
    %42 = arith.addf %38, %41 : vector<1x128xf32>
    %c0_37 = arith.constant 0 : index
    %c0_38 = arith.constant 0 : index
    %c0_39 = arith.constant 0 : index
    %c0_40 = arith.constant 0 : index
    %43 = vector.load %arg4[%c0_37, %c0_38, %c0_39, %c0_40] : memref<1x12x1x128xf32, #tpu.memory_space<vmem>>, vector<1x1x1x128xf32>
    %44 = vector.shape_cast %43 : vector<1x1x1x128xf32> to vector<1x128xf32>
    %45 = vector.shape_cast %42 : vector<1x128xf32> to vector<1x1x1x128xf32>
    tpu.vector_store %arg4[%c0_37, %c0_38, %c0_39, %c0_40], %45 {strides = array<i32>} : memref<1x12x1x128xf32, #tpu.memory_space<vmem>>, vector<1x1x1x128xf32>,
    %c0_41 = arith.constant 0 : index
    %c4 = arith.constant 4 : index
    %c0_42 = arith.constant 0 : index
    %c0_43 = arith.constant 0 : index
    %46 = vector.load %arg4[%c0_41, %c4, %c0_42, %c0_43] : memref<1x12x1x128xf32, #tpu.memory_space<vmem>>, vector<1x1x1x128xf32>
    %47 = vector.shape_cast %46 : vector<1x1x1x128xf32> to vector<1x128xf32>
    %cst_44 = arith.constant dense<0.000000e+00> : vector<128xf32>
    %48 = vector.multi_reduction <add>, %34, %cst_44 [0] : vector<2x128xf32> to vector<128xf32>
    %49 = vector.shape_cast %48 : vector<128xf32> to vector<1x128xf32>
    %50 = arith.addf %47, %49 : vector<1x128xf32>
    %c0_45 = arith.constant 0 : index
    %c4_46 = arith.constant 4 : index
    %c0_47 = arith.constant 0 : index
    %c0_48 = arith.constant 0 : index
    %51 = vector.load %arg4[%c0_45, %c4_46, %c0_47, %c0_48] : memref<1x12x1x128xf32, #tpu.memory_space<vmem>>, vector<1x1x1x128xf32>
    %52 = vector.shape_cast %51 : vector<1x1x1x128xf32> to vector<1x128xf32>
    %53 = vector.shape_cast %50 : vector<1x128xf32> to vector<1x1x1x128xf32>
    tpu.vector_store %arg4[%c0_45, %c4_46, %c0_47, %c0_48], %53 {strides = array<i32>} : memref<1x12x1x128xf32, #tpu.memory_space<vmem>>, vector<1x1x1x128xf32>,
    %c0_49 = arith.constant 0 : index
    %c8 = arith.constant 8 : index
    %c0_50 = arith.constant 0 : index
    %c0_51 = arith.constant 0 : index
    %54 = vector.load %arg4[%c0_49, %c8, %c0_50, %c0_51] : memref<1x12x1x128xf32, #tpu.memory_space<vmem>>, vector<1x1x1x128xf32>
    %55 = vector.shape_cast %54 : vector<1x1x1x128xf32> to vector<1x128xf32>
    %cst_52 = arith.constant dense<0.000000e+00> : vector<128xf32>
    %56 = vector.multi_reduction <add>, %36, %cst_52 [0] : vector<2x128xf32> to vector<128xf32>
    %57 = vector.shape_cast %56 : vector<128xf32> to vector<1x128xf32>
    %58 = arith.addf %55, %57 : vector<1x128xf32>
    %c0_53 = arith.constant 0 : index
    %c8_54 = arith.constant 8 : index
    %c0_55 = arith.constant 0 : index
    %c0_56 = arith.constant 0 : index
    %59 = vector.load %arg4[%c0_53, %c8_54, %c0_55, %c0_56] : memref<1x12x1x128xf32, #tpu.memory_space<vmem>>, vector<1x1x1x128xf32>
    %60 = vector.shape_cast %59 : vector<1x1x1x128xf32> to vector<1x128xf32>
    %61 = vector.shape_cast %58 : vector<1x128xf32> to vector<1x1x1x128xf32>
    tpu.vector_store %arg4[%c0_53, %c8_54, %c0_55, %c0_56], %61 {strides = array<i32>} : memref<1x12x1x128xf32, #tpu.memory_space<vmem>>, vector<1x1x1x128xf32>,
    %62 = arith.mulf %21, %33 : vector<2x128xf32>
    %c0_57 = arith.constant 0 : index
    %c1_58 = arith.constant 1 : index
    %c0_59 = arith.constant 0 : index
    %c0_60 = arith.constant 0 : index
    %63 = vector.load %arg3[%c0_57, %c1_58, %c0_59, %c0_60] : memref<1x4x2x128xf32, #tpu.memory_space<vmem>>, vector<1x1x2x128xf32>
    %64 = vector.shape_cast %63 : vector<1x1x2x128xf32> to vector<2x128xf32>
    %c0_61 = arith.constant 0 : index
    %c1_62 = arith.constant 1 : index
    %c0_63 = arith.constant 0 : index
    %c0_64 = arith.constant 0 : index
    %65 = vector.load %arg4[%c0_61, %c1_62, %c0_63, %c0_64] : memref<1x12x1x128xf32, #tpu.memory_space<vmem>>, vector<1x1x1x128xf32>
    %66 = vector.shape_cast %65 : vector<1x1x1x128xf32> to vector<1x128xf32>
    %67 = arith.mulf %62, %64 : vector<2x128xf32>
    %cst_65 = arith.constant dense<0.000000e+00> : vector<128xf32>
    %68 = vector.multi_reduction <add>, %67, %cst_65 [0] : vector<2x128xf32> to vector<128xf32>
    %69 = vector.shape_cast %68 : vector<128xf32> to vector<1x128xf32>
    %70 = arith.addf %66, %69 : vector<1x128xf32>
    %c0_66 = arith.constant 0 : index
    %c1_67 = arith.constant 1 : index
    %c0_68 = arith.constant 0 : index
    %c0_69 = arith.constant 0 : index
    %71 = vector.load %arg4[%c0_66, %c1_67, %c0_68, %c0_69] : memref<1x12x1x128xf32, #tpu.memory_space<vmem>>, vector<1x1x1x128xf32>
    %72 = vector.shape_cast %71 : vector<1x1x1x128xf32> to vector<1x128xf32>
    %73 = vector.shape_cast %70 : vector<1x128xf32> to vector<1x1x1x128xf32>
    tpu.vector_store %arg4[%c0_66, %c1_67, %c0_68, %c0_69], %73 {strides = array<i32>} : memref<1x12x1x128xf32, #tpu.memory_space<vmem>>, vector<1x1x1x128xf32>,
    %c0_70 = arith.constant 0 : index
    %c5 = arith.constant 5 : index
    %c0_71 = arith.constant 0 : index
    %c0_72 = arith.constant 0 : index
    %74 = vector.load %arg4[%c0_70, %c5, %c0_71, %c0_72] : memref<1x12x1x128xf32, #tpu.memory_space<vmem>>, vector<1x1x1x128xf32>
    %75 = vector.shape_cast %74 : vector<1x1x1x128xf32> to vector<1x128xf32>
    %cst_73 = arith.constant dense<0.000000e+00> : vector<128xf32>
    %76 = vector.multi_reduction <add>, %62, %cst_73 [0] : vector<2x128xf32> to vector<128xf32>
    %77 = vector.shape_cast %76 : vector<128xf32> to vector<1x128xf32>
    %78 = arith.addf %75, %77 : vector<1x128xf32>
    %c0_74 = arith.constant 0 : index
    %c5_75 = arith.constant 5 : index
    %c0_76 = arith.constant 0 : index
    %c0_77 = arith.constant 0 : index
    %79 = vector.load %arg4[%c0_74, %c5_75, %c0_76, %c0_77] : memref<1x12x1x128xf32, #tpu.memory_space<vmem>>, vector<1x1x1x128xf32>
    %80 = vector.shape_cast %79 : vector<1x1x1x128xf32> to vector<1x128xf32>
    %81 = vector.shape_cast %78 : vector<1x128xf32> to vector<1x1x1x128xf32>
    tpu.vector_store %arg4[%c0_74, %c5_75, %c0_76, %c0_77], %81 {strides = array<i32>} : memref<1x12x1x128xf32, #tpu.memory_space<vmem>>, vector<1x1x1x128xf32>,
    %c0_78 = arith.constant 0 : index
    %c9 = arith.constant 9 : index
    %c0_79 = arith.constant 0 : index
    %c0_80 = arith.constant 0 : index
    %82 = vector.load %arg4[%c0_78, %c9, %c0_79, %c0_80] : memref<1x12x1x128xf32, #tpu.memory_space<vmem>>, vector<1x1x1x128xf32>
    %83 = vector.shape_cast %82 : vector<1x1x1x128xf32> to vector<1x128xf32>
    %cst_81 = arith.constant dense<0.000000e+00> : vector<128xf32>
    %84 = vector.multi_reduction <add>, %64, %cst_81 [0] : vector<2x128xf32> to vector<128xf32>
    %85 = vector.shape_cast %84 : vector<128xf32> to vector<1x128xf32>
    %86 = arith.addf %83, %85 : vector<1x128xf32>
    %c0_82 = arith.constant 0 : index
    %c9_83 = arith.constant 9 : index
    %c0_84 = arith.constant 0 : index
    %c0_85 = arith.constant 0 : index
    %87 = vector.load %arg4[%c0_82, %c9_83, %c0_84, %c0_85] : memref<1x12x1x128xf32, #tpu.memory_space<vmem>>, vector<1x1x1x128xf32>
    %88 = vector.shape_cast %87 : vector<1x1x1x128xf32> to vector<1x128xf32>
    %89 = vector.shape_cast %86 : vector<1x128xf32> to vector<1x1x1x128xf32>
    tpu.vector_store %arg4[%c0_82, %c9_83, %c0_84, %c0_85], %89 {strides = array<i32>} : memref<1x12x1x128xf32, #tpu.memory_space<vmem>>, vector<1x1x1x128xf32>,
    %90 = arith.mulf %26, %33 : vector<2x128xf32>
    %c0_86 = arith.constant 0 : index
    %c2_87 = arith.constant 2 : index
    %c0_88 = arith.constant 0 : index
    %c0_89 = arith.constant 0 : index
    %91 = vector.load %arg3[%c0_86, %c2_87, %c0_88, %c0_89] : memref<1x4x2x128xf32, #tpu.memory_space<vmem>>, vector<1x1x2x128xf32>
    %92 = vector.shape_cast %91 : vector<1x1x2x128xf32> to vector<2x128xf32>
    %c0_90 = arith.constant 0 : index
    %c2_91 = arith.constant 2 : index
    %c0_92 = arith.constant 0 : index
    %c0_93 = arith.constant 0 : index
    %93 = vector.load %arg4[%c0_90, %c2_91, %c0_92, %c0_93] : memref<1x12x1x128xf32, #tpu.memory_space<vmem>>, vector<1x1x1x128xf32>
    %94 = vector.shape_cast %93 : vector<1x1x1x128xf32> to vector<1x128xf32>
    %95 = arith.mulf %90, %92 : vector<2x128xf32>
    %cst_94 = arith.constant dense<0.000000e+00> : vector<128xf32>
    %96 = vector.multi_reduction <add>, %95, %cst_94 [0] : vector<2x128xf32> to vector<128xf32>
    %97 = vector.shape_cast %96 : vector<128xf32> to vector<1x128xf32>
    %98 = arith.addf %94, %97 : vector<1x128xf32>
    %c0_95 = arith.constant 0 : index
    %c2_96 = arith.constant 2 : index
    %c0_97 = arith.constant 0 : index
    %c0_98 = arith.constant 0 : index
    %99 = vector.load %arg4[%c0_95, %c2_96, %c0_97, %c0_98] : memref<1x12x1x128xf32, #tpu.memory_space<vmem>>, vector<1x1x1x128xf32>
    %100 = vector.shape_cast %99 : vector<1x1x1x128xf32> to vector<1x128xf32>
    %101 = vector.shape_cast %98 : vector<1x128xf32> to vector<1x1x1x128xf32>
    tpu.vector_store %arg4[%c0_95, %c2_96, %c0_97, %c0_98], %101 {strides = array<i32>} : memref<1x12x1x128xf32, #tpu.memory_space<vmem>>, vector<1x1x1x128xf32>,
    %c0_99 = arith.constant 0 : index
    %c6 = arith.constant 6 : index
    %c0_100 = arith.constant 0 : index
    %c0_101 = arith.constant 0 : index
    %102 = vector.load %arg4[%c0_99, %c6, %c0_100, %c0_101] : memref<1x12x1x128xf32, #tpu.memory_space<vmem>>, vector<1x1x1x128xf32>
    %103 = vector.shape_cast %102 : vector<1x1x1x128xf32> to vector<1x128xf32>
    %cst_102 = arith.constant dense<0.000000e+00> : vector<128xf32>
    %104 = vector.multi_reduction <add>, %90, %cst_102 [0] : vector<2x128xf32> to vector<128xf32>
    %105 = vector.shape_cast %104 : vector<128xf32> to vector<1x128xf32>
    %106 = arith.addf %103, %105 : vector<1x128xf32>
    %c0_103 = arith.constant 0 : index
    %c6_104 = arith.constant 6 : index
    %c0_105 = arith.constant 0 : index
    %c0_106 = arith.constant 0 : index
    %107 = vector.load %arg4[%c0_103, %c6_104, %c0_105, %c0_106] : memref<1x12x1x128xf32, #tpu.memory_space<vmem>>, vector<1x1x1x128xf32>
    %108 = vector.shape_cast %107 : vector<1x1x1x128xf32> to vector<1x128xf32>
    %109 = vector.shape_cast %106 : vector<1x128xf32> to vector<1x1x1x128xf32>
    tpu.vector_store %arg4[%c0_103, %c6_104, %c0_105, %c0_106], %109 {strides = array<i32>} : memref<1x12x1x128xf32, #tpu.memory_space<vmem>>, vector<1x1x1x128xf32>,
    %c0_107 = arith.constant 0 : index
    %c10 = arith.constant 10 : index
    %c0_108 = arith.constant 0 : index
    %c0_109 = arith.constant 0 : index
    %110 = vector.load %arg4[%c0_107, %c10, %c0_108, %c0_109] : memref<1x12x1x128xf32, #tpu.memory_space<vmem>>, vector<1x1x1x128xf32>
    %111 = vector.shape_cast %110 : vector<1x1x1x128xf32> to vector<1x128xf32>
    %cst_110 = arith.constant dense<0.000000e+00> : vector<128xf32>
    %112 = vector.multi_reduction <add>, %92, %cst_110 [0] : vector<2x128xf32> to vector<128xf32>
    %113 = vector.shape_cast %112 : vector<128xf32> to vector<1x128xf32>
    %114 = arith.addf %111, %113 : vector<1x128xf32>
    %c0_111 = arith.constant 0 : index
    %c10_112 = arith.constant 10 : index
    %c0_113 = arith.constant 0 : index
    %c0_114 = arith.constant 0 : index
    %115 = vector.load %arg4[%c0_111, %c10_112, %c0_113, %c0_114] : memref<1x12x1x128xf32, #tpu.memory_space<vmem>>, vector<1x1x1x128xf32>
    %116 = vector.shape_cast %115 : vector<1x1x1x128xf32> to vector<1x128xf32>
    %117 = vector.shape_cast %114 : vector<1x128xf32> to vector<1x1x1x128xf32>
    tpu.vector_store %arg4[%c0_111, %c10_112, %c0_113, %c0_114], %117 {strides = array<i32>} : memref<1x12x1x128xf32, #tpu.memory_space<vmem>>, vector<1x1x1x128xf32>,
    %118 = arith.mulf %31, %33 : vector<2x128xf32>
    %c0_115 = arith.constant 0 : index
    %c3_116 = arith.constant 3 : index
    %c0_117 = arith.constant 0 : index
    %c0_118 = arith.constant 0 : index
    %119 = vector.load %arg3[%c0_115, %c3_116, %c0_117, %c0_118] : memref<1x4x2x128xf32, #tpu.memory_space<vmem>>, vector<1x1x2x128xf32>
    %120 = vector.shape_cast %119 : vector<1x1x2x128xf32> to vector<2x128xf32>
    %c0_119 = arith.constant 0 : index
    %c3_120 = arith.constant 3 : index
    %c0_121 = arith.constant 0 : index
    %c0_122 = arith.constant 0 : index
    %121 = vector.load %arg4[%c0_119, %c3_120, %c0_121, %c0_122] : memref<1x12x1x128xf32, #tpu.memory_space<vmem>>, vector<1x1x1x128xf32>
    %122 = vector.shape_cast %121 : vector<1x1x1x128xf32> to vector<1x128xf32>
    %123 = arith.mulf %118, %120 : vector<2x128xf32>
    %cst_123 = arith.constant dense<0.000000e+00> : vector<128xf32>
    %124 = vector.multi_reduction <add>, %123, %cst_123 [0] : vector<2x128xf32> to vector<128xf32>
    %125 = vector.shape_cast %124 : vector<128xf32> to vector<1x128xf32>
    %126 = arith.addf %122, %125 : vector<1x128xf32>
    %c0_124 = arith.constant 0 : index
    %c3_125 = arith.constant 3 : index
    %c0_126 = arith.constant 0 : index
    %c0_127 = arith.constant 0 : index
    %127 = vector.load %arg4[%c0_124, %c3_125, %c0_126, %c0_127] : memref<1x12x1x128xf32, #tpu.memory_space<vmem>>, vector<1x1x1x128xf32>
    %128 = vector.shape_cast %127 : vector<1x1x1x128xf32> to vector<1x128xf32>
    %129 = vector.shape_cast %126 : vector<1x128xf32> to vector<1x1x1x128xf32>
    tpu.vector_store %arg4[%c0_124, %c3_125, %c0_126, %c0_127], %129 {strides = array<i32>} : memref<1x12x1x128xf32, #tpu.memory_space<vmem>>, vector<1x1x1x128xf32>,
    %c0_128 = arith.constant 0 : index
    %c7 = arith.constant 7 : index
    %c0_129 = arith.constant 0 : index
    %c0_130 = arith.constant 0 : index
    %130 = vector.load %arg4[%c0_128, %c7, %c0_129, %c0_130] : memref<1x12x1x128xf32, #tpu.memory_space<vmem>>, vector<1x1x1x128xf32>
    %131 = vector.shape_cast %130 : vector<1x1x1x128xf32> to vector<1x128xf32>
    %cst_131 = arith.constant dense<0.000000e+00> : vector<128xf32>
    %132 = vector.multi_reduction <add>, %118, %cst_131 [0] : vector<2x128xf32> to vector<128xf32>
    %133 = vector.shape_cast %132 : vector<128xf32> to vector<1x128xf32>
    %134 = arith.addf %131, %133 : vector<1x128xf32>
    %c0_132 = arith.constant 0 : index
    %c7_133 = arith.constant 7 : index
    %c0_134 = arith.constant 0 : index
    %c0_135 = arith.constant 0 : index
    %135 = vector.load %arg4[%c0_132, %c7_133, %c0_134, %c0_135] : memref<1x12x1x128xf32, #tpu.memory_space<vmem>>, vector<1x1x1x128xf32>
    %136 = vector.shape_cast %135 : vector<1x1x1x128xf32> to vector<1x128xf32>
    %137 = vector.shape_cast %134 : vector<1x128xf32> to vector<1x1x1x128xf32>
    tpu.vector_store %arg4[%c0_132, %c7_133, %c0_134, %c0_135], %137 {strides = array<i32>} : memref<1x12x1x128xf32, #tpu.memory_space<vmem>>, vector<1x1x1x128xf32>,
    %c0_136 = arith.constant 0 : index
    %c11 = arith.constant 11 : index
    %c0_137 = arith.constant 0 : index
    %c0_138 = arith.constant 0 : index
    %138 = vector.load %arg4[%c0_136, %c11, %c0_137, %c0_138] : memref<1x12x1x128xf32, #tpu.memory_space<vmem>>, vector<1x1x1x128xf32>
    %139 = vector.shape_cast %138 : vector<1x1x1x128xf32> to vector<1x128xf32>
    %cst_139 = arith.constant dense<0.000000e+00> : vector<128xf32>
    %140 = vector.multi_reduction <add>, %120, %cst_139 [0] : vector<2x128xf32> to vector<128xf32>
    %141 = vector.shape_cast %140 : vector<128xf32> to vector<1x128xf32>
    %142 = arith.addf %139, %141 : vector<1x128xf32>
    %c0_140 = arith.constant 0 : index
    %c11_141 = arith.constant 11 : index
    %c0_142 = arith.constant 0 : index
    %c0_143 = arith.constant 0 : index
    %143 = vector.load %arg4[%c0_140, %c11_141, %c0_142, %c0_143] : memref<1x12x1x128xf32, #tpu.memory_space<vmem>>, vector<1x1x1x128xf32>
    %144 = vector.shape_cast %143 : vector<1x1x1x128xf32> to vector<1x128xf32>
    %145 = vector.shape_cast %142 : vector<1x128xf32> to vector<1x1x1x128xf32>
    tpu.vector_store %arg4[%c0_140, %c11_141, %c0_142, %c0_143], %145 {strides = array<i32>} : memref<1x12x1x128xf32, #tpu.memory_space<vmem>>, vector<1x1x1x128xf32>,
    return
  }
  func.func @transform_0(%arg0: i32, %arg1: i32) -> (i32, i32, i32, i32) {
    %c0_i32 = arith.constant 0 : i32
    %c0_i32_0 = arith.constant 0 : i32
    %c0_i32_1 = arith.constant 0 : i32
    return %arg0, %c0_i32, %arg1, %c0_i32_0 : i32, i32, i32, i32
  }
  func.func @transform_1(%arg0: i32, %arg1: i32) -> (i32, i32, i32, i32) {
    %c0_i32 = arith.constant 0 : i32
    %c0_i32_0 = arith.constant 0 : i32
    %c0_i32_1 = arith.constant 0 : i32
    return %arg0, %c0_i32, %arg1, %c0_i32_0 : i32, i32, i32, i32
  }
  func.func @transform_2(%arg0: i32, %arg1: i32) -> (i32, i32, i32, i32) {
    %c0_i32 = arith.constant 0 : i32
    %c0_i32_0 = arith.constant 0 : i32
    %c0_i32_1 = arith.constant 0 : i32
    %c0_i32_2 = arith.constant 0 : i32
    return %arg0, %c0_i32, %c0_i32_0, %c0_i32_1 : i32, i32, i32, i32
  }
}

</mosaic_0001>

<bundles_post_ra>
// kernel: tpu_custom_call.1
= control target key start
LH: loop header
LB: loop body
LE: loop exit
PB: predicated region body
PF: predicated region fallthrough
CT: control target
= control target key end

     0   :  { %7 = vsyncpa [#allocation3], 0  ;;  %s1061_s0 = inlined_call_operand.hbm [shape: f32[2,4,2,128], index: 0, kind: input, shape index: {}]   ;;  %s1062_s1 = inlined_call_operand.hbm [shape: f32[2,4,2,128], index: 1, kind: input, shape index: {}]   ;;  %s1063_s2 = inlined_call_operand.hbm [shape: f32[2,12,1,128], index: 2, kind: output, shape index: {}]  }
   0x1   :  { %9 = vsyncpa [#allocation3 + $0x1], 0 }
   0x2   :  { %10 = vsyncpa [#allocation6], 0 }
   0x3   :  { %12 = vsyncpa [#allocation6 + $0x1], 0 }
   0x4   :  { %13 = vsyncpa [#allocation4], 0 }
   0x5   :  { %15 = vsyncpa [#allocation4 + $0x1], 0  ;;  %s846_s9 = smov 0   ;;  %s848_s10 = smov 0  }
   0x6   :  { %s850_s11 = smov 0   ;;  %s852_s12 = smov 0  }
   0x7   :  { %s854_s13 = smov 0   ;;  %s856_s14 = smov 0  }
   0x8 LB: > { %s549_s15 = sadd.s32 4294967295, %s824_s14   ;;  %s550_s16 = sadd.s32 4294967294, %s824_s14   ;;  %s824_s14 = sphi %s856_s14, %s21_s14   ;;  %s820_s13 = sphi %s854_s13, %s1073_s13   ;;  %s816_s12 = sphi %s852_s12, %s1072_s12   ;;  %s812_s11 = sphi %s850_s11, %s1071_s11   ;;  %s808_s10 = sphi %s848_s10, %s1070_s10   ;;  %s804_s9 = sphi %s846_s9, %s1069_s9  }
   0x9   : > { %s33_s17 = sadd.s32 1, %s820_s13  ;;  %s42_s18 = sadd.s32 1, %s812_s11 }
   0xa   : > { %p35_p0 = scmp.ge.s32.totalorder %s33_s17, 2  ;;  %p49_p1 = scmp.ne.s32.totalorder %s812_s11, %s808_s10 }
   0xb   : > { %p50_p2 = scmp.eq.s32.totalorder %s824_s14, 0  ;;  %p55_p3 = scmp.ne.s32.totalorder %s808_s10, %s804_s9 }
   0xc   : > { %s1075_s17 = smov (%p35_p0, %s33_s17), 0  ;;  %p56_p5 = scmp.eq.s32.totalorder %s549_s15, 0 }
   0xd   : > { %p887_p4 = por %p50_p2, %p49_p1  ;;  %s37_s20 = ssub.s32 %s820_s13, %s1075_s17 }
   0xe   : > { %p107_p6 = scmp.eq.s32.totalorder %s549_s15, 1  ;;  %p40_p7 = scmp.eq.s32.totalorder %s37_s20, 0 }
   0xf   : > { %p893_p8 = por %p56_p5, %p55_p3  ;;  %p113_p10 = scmp.eq.s32.totalorder %s550_s16, 1 }
  0x10   : > { %p897_p9 = por %p107_p6, %p49_p1  ;;  %p552_p12 = scmp.ge.s32.totalorder %s824_s14, 2 }
  0x11   : > { %s902_s23 = scalar_select %p40_p7, %s812_s11, %s42_s18  }
  0x12   : > { %p904_p11 = por %p113_p10, %p55_p3  ;;  %p613_p13 = scmp.lt.s32.totalorder %s824_s14, 2 }
  0x13   : > { %s911_s25 = sand.u32 1, %s812_s11   ;;  %s592_s27 = sshll.u32 %s820_s13, 3 }
  0x14   : > { %s553_s26 = sshll.u32 %s911_s25, 3  ;;  %s143_s30 = scalar_lea.hbm %s1061_s0, %s592_s27 }
  0x15   : > { %s137_s3 = scalar_lea.vmem [#allocation2], %s553_s26  ;;  %s144_s5 = sshll.u32 %s143_s30, 4  ;;  %s145_s5 = int_to_ptr.hbm [resolvable:$true] %s144_s5 }
  0x16   : > { %s146_s4 = sshll.u32 %s137_s3, 4  ;;  %p920_p0 = pnand %p613_p13, %p887_p4  ;;  %s147_s4 = int_to_ptr.vmem [resolvable:$true] %s146_s4 }
  0x17   : > { %p559_p1 = scmp.ge.s32.totalorder %s824_s14, 1  ;;  %s134_s7 = scalar_lea.sflag [#allocation3], %s911_s25 }
  0x18   : > { %s826_s8 = smov 32   ;;  %s827_s15 = smov 2  }
  0x19   : > { %605 = dma.hbm_to_vmem [thread:$0]  (!%p920_p0), %s145_s5, 128, %s147_s4, %s134_s7, %s826_s8, %s826_s8, %s827_s15  }
  0x1a   : > { %p177_p2 = scmp.lt.s32.totalorder %s824_s14, 3  ;;  %s166_s20 = scalar_lea.hbm %s1062_s1, %s592_s27 }
  0x1b   : > { %s167_s28 = sshll.u32 %s166_s20, 4  ;;  %s160_s19 = scalar_lea.vmem [#allocation5], %s553_s26  ;;  %s168_s28 = int_to_ptr.hbm [resolvable:$true] %s167_s28 }
  0x1c   : > { %p178_p3 = pnand %p559_p1, %p177_p2  ;;  %s169_s29 = sshll.u32 %s160_s19, 4  ;;  %s170_s29 = int_to_ptr.vmem [resolvable:$true] %s169_s29 }
  0x1d   : > { %s157_s30 = scalar_lea.sflag [#allocation6], %s911_s25  ;;  %s936_s3 = sand.u32 (!%p178_p3), 1, %s808_s10  }
  0x1e   : > { %608 = dma.hbm_to_vmem [thread:$0]  (!%p920_p0), %s168_s28, 128, %s170_s29, %s157_s30, %s826_s8, %s826_s8, %s827_s15  }
  0x1f   : > { %181 = sbr.rel (%p178_p3) target bundleno = 110 (0x6e), region = 28  ;;  %s560_s4 = sshll.u32 (!%p178_p3), %s936_s3, 3 }
  0x20   : > { %s184_s5 = scalar_lea.sflag (!%p178_p3), [#allocation3], %s936_s3  ;;  %s187_s7 = scalar_lea.vmem (!%p178_p3), [#allocation2], %s560_s4 }
  0x24   : > { %791 = dma.done.wait (%p893_p8), %s184_s5, 128  }
  0x25   : > { %793 = vsyncadd (%p893_p8), %s184_s5, 4294967168  ;;  %s194_s25 = scalar_lea.sflag [#allocation6], %s936_s3  ;;  %s945_s26 = scalar_lea.vmem [#allocation5], %s560_s4 }
  0x26   : > { %795 = dma.done.wait (%p893_p8), %s194_s25, 128  }
  0x27   : > { %797 = vsyncadd (%p893_p8), %s194_s25, 4294967168  ;;  %s594_s27 = smul.u32 12, %s936_s3  ;;  %v828_v0 = vmov 0.0   ;;  %v240_v1 = vld [vmem:[%s187_s7] sm:$0x3]  ;;  %vm283_vm0 = vcmask 1041408  }
  0x28   : > { %v562_v2 = vld [vmem:[%s187_s7 + $0x2] sm:$0x3]  ;;  %v563_v4 = vld [vmem:[%s187_s7 + $0x4] sm:$0x3]  ;;  %v564_v5 = vld [vmem:[%s187_s7 + $0x6] sm:$0x3] }
  0x29   : > { %s952_s6 = scalar_lea.vmem [#allocation7], %s594_s27  ;;  %v243_v3 = vmax.f32 %v240_v1, %v562_v2  ;;  %v967_v16 = vld [vmem:[%s945_s26] sm:$0x3]  ;;  %v972_v18 = vld [vmem:[%s945_s26 + $0x2] sm:$0x3]  ;;  %s595_s21 = smul.u32 12, %s816_s12 }
  0x2a   : > { %228 = vst [vmem:[%s952_s6] sm:$0x1] %v828_v0  ;;  %v306_v17 = vsel %vm283_vm0, %v967_v16, 0.0  ;;  %v343_v20 = vsel %vm283_vm0, %v972_v18, 0.0  ;;  %v977_v22 = vld [vmem:[%s945_s26 + $0x4] sm:$0x3]  ;;  %s438_s16 = sshll.u32 %s952_s6, 4  ;;  %s439_s16 = int_to_ptr.vmem [resolvable:$true] %s438_s16 }
  0x2b   : > { %229 = vst [vmem:[%s952_s6 + $0x1] sm:$0x1] %v828_v0  ;;  %v246_v6 = vmax.f32 %v243_v3, %v563_v4  ;;  %v307_v19 = vrot.slane %v306_v17, 4  ;;  %v344_v21 = vrot.slane %v343_v20, 4  ;;  %v380_v25 = vsel %vm283_vm0, %v977_v22, 0.0  ;;  %s437_s15 = scalar_lea.hbm %s1063_s2, %s595_s21  ;;  %s427_s20 = scalar_lea.sflag [#allocation4], %s936_s3 }
  0x2c   : > { %230 = vst [vmem:[%s952_s6 + $0x2] sm:$0x1] %v828_v0  ;;  %v381_v28 = vrot.slane %v380_v25, 4  ;;  %v982_v29 = vld [vmem:[%s945_s26 + $0x6] sm:$0x3]  ;;  %s440_s18 = sshll.u32 %s437_s15, 4  ;;  %s441_s18 = int_to_ptr.hbm [resolvable:$true] %s440_s18 }
  0x2d   : > { %231 = vst [vmem:[%s952_s6 + $0x3] sm:$0x1] %v828_v0  ;;  %v249_v7 = vmax.f32 %v246_v6, %v564_v5  ;;  %v308_v24 = vadd.f32 %v307_v19, %v306_v17  ;;  %v345_v27 = vadd.f32 %v344_v21, %v343_v20  ;;  %v417_v33 = vsel %vm283_vm0, %v982_v29, 0.0  ;;  %s752_s28 = sshra.s32 %s441_s18, 4  ;;  %s758_s4 = scalar_lea.hbm %s1063_s2, 24  ;;  %s753_s28 = int_to_ptr.hbm [resolvable:$true] %s752_s28 }
  0x2e   : > { %232 = vst [vmem:[%s952_s6 + $0x4] sm:$0x1] %v828_v0  ;;  %v382_v36 = vadd.f32 %v381_v28, %v380_v25  ;;  %v418_v37 = vrot.slane %v417_v33, 4  ;;  %s754_s19 = scalar_lea.hbm %s753_s28, 12  ;;  %p759_p7 = scmp.lt.s32.totalorder %s753_s28, %s1063_s2 }
  0x2f   : > { %233 = vst [vmem:[%s952_s6 + $0x5] sm:$0x1] %v828_v0  ;;  %v250_v8 = vsub.f32 %v240_v1, %v249_v7  ;;  %v253_v9 = vsub.f32 %v562_v2, %v249_v7  ;;  %v257_v10 = vsub.f32 %v563_v4, %v249_v7  ;;  %v261_v11 = vsub.f32 %v564_v5, %v249_v7  ;;  %p755_p4 = scmp.ne.s32.totalorder %s753_s28, %s754_s19  ;;  %p760_p8 = scmp.lt.s32.totalorder %s758_s4, %s754_s19 }
  0x30   : > { %234 = vst [vmem:[%s952_s6 + $0x6] sm:$0x1] %v828_v0  ;;  %v309_v32 = vrot.slane %v308_v24, 2  ;;  %v346_v35 = vrot.slane %v345_v27, 2  ;;  %v383_v41 = vrot.slane %v382_v36, 2  ;;  %v419_v42 = vadd.f32 %v418_v37, %v417_v33 }
  0x31   : > { %235 = vst [vmem:[%s952_s6 + $0x7] sm:$0x1] %v828_v0  ;;  %v251_v12 = vmul.f32 1.442695, %v250_v8  ;;  %v254_v13 = vmul.f32 1.442695, %v253_v9  ;;  %p756_p5 = pnand %p755_p4, %p897_p9  ;;  %p761_p10 = por %p760_p8, %p759_p7 }
  0x32   : > { %236 = vst [vmem:[%s952_s6 + $0x8] sm:$0x1] %v828_v0  ;;  %v258_v14 = vmul.f32 1.442695, %v257_v10  ;;  %v262_v15 = vmul.f32 1.442695, %v261_v11  ;;  %v310_v39 = vadd.f32 %v309_v32, %v308_v24  ;;  %v347_v40 = vadd.f32 %v346_v35, %v345_v27 }
  0x33   : > { %237 = vst [vmem:[%s952_s6 + $0x9] sm:$0x1] %v828_v0  ;;  %668 = vpow2.f32 %v251_v12  ;;  %v384_v46 = vadd.f32 %v383_v41, %v382_v36  ;;  %v420_v47 = vrot.slane %v419_v42, 2  ;;  %p757_p6 = pneg %p756_p5 }
  0x34   : > { %238 = vst [vmem:[%s952_s6 + $0xa] sm:$0x1] %v828_v0  ;;  %670 = vpow2.f32 %v254_v13  ;;  %v311_v44 = vrot.slane %v310_v39, 1  ;;  %v348_v45 = vrot.slane %v347_v40, 1 }
  0x35   : > { %239 = vst [vmem:[%s952_s6 + $0xb] sm:$0x1] %v828_v0  ;;  %672 = vpow2.f32 %v258_v14  ;;  %v421_v51 = vadd.f32 %v420_v47, %v419_v42  ;;  %v385_v55 = vrot.slane %v384_v46, 1  ;;  %p762_p13 = pnand %p761_p10, %p757_p6 }
  0x36   : > { %674 = vpow2.f32 %v262_v15  ;;  %v312_v49 = vadd.f32 %v311_v44, %v310_v39  ;;  %v349_v50 = vadd.f32 %v348_v45, %v347_v40 }
  0x37   : > { %v422_v56 = vrot.slane %v421_v51, 1  ;;  %v386_v58 = vadd.f32 %v385_v55, %v384_v46 }
  0x39   : > { %v669_v23 = vpop.eup %668  ;;  %v567_v48 = vld [vmem:[%s952_s6 + $0x8] sm:$0x1]  ;;  %v423_v59 = vadd.f32 %v422_v56, %v421_v51 }
  0x3a   : > { %v671_v26 = vpop.eup %670  ;;  %v574_v52 = vld [vmem:[%s952_s6 + $0x9] sm:$0x1]  ;;  %v313_v53 = vadd.f32 %v567_v48, %v312_v49 }
  0x3b   : > { %v673_v30 = vpop.eup %672  ;;  %v256_v31 = vadd.f32 %v671_v26, %v669_v23  ;;  %v350_v54 = vadd.f32 %v574_v52, %v349_v50  ;;  %v581_v57 = vld [vmem:[%s952_s6 + $0xa] sm:$0x1]  ;;  %v565_v50 = vld [vmem:[%s952_s6 + $0x4] sm:$0x1] }
  0x3c   : > { %v675_v34 = vpop.eup %674  ;;  %568 = vst [vmem:[%s952_s6 + $0x8] sm:$0x1] %v313_v53  ;;  %v588_v61 = vld [vmem:[%s952_s6 + $0xb] sm:$0x1]  ;;  %v387_v63 = vadd.f32 %v581_v57, %v386_v58 }
  0x3d   : > { %v260_v38 = vadd.f32 %v673_v30, %v256_v31  ;;  %575 = vst [vmem:[%s952_s6 + $0x9] sm:$0x1] %v350_v54  ;;  %v424_v0 = vadd.f32 %v588_v61, %v423_v59  ;;  %v572_v54 = vld [vmem:[%s952_s6 + $0x5] sm:$0x1] }
  0x3e   : > { %582 = vst [vmem:[%s952_s6 + $0xa] sm:$0x1] %v387_v63  ;;  %v281_v63 = vld [vmem:[%s952_s6] sm:$0x1] }
  0x3f   : > { %v264_v43 = vadd.f32 %v675_v34, %v260_v38  ;;  %589 = vst [vmem:[%s952_s6 + $0xb] sm:$0x1] %v424_v0  ;;  %v570_v0 = vld [vmem:[%s952_s6 + $0x1] sm:$0x1] }
  0x41   : > { %676 = vrcp.f32 %v264_v43  ;;  %v276_v1 = vand.u32 2147483648, %v264_v43  ;;  %vm270_vm1 = vweird.f32 %v264_v43  ;;  %v274_v3 = vand.u32 2147483647, %v264_v43 }
  0x43   : > { %v277_v5 = vor.u32 1.1754944e-38, %v276_v1  ;;  %vm275_vm4 = vcmp.eq.f32.partialorder %v274_v3, 8.507059e+37 }
  0x47   : > { %v677_v60 = vpop.eup %676 }
  0x48   : > { %v266_v62 = vmul.f32 %v677_v60, %v264_v43  ;;  %vm271_vm2 = vweird.f32 %v677_v60 }
  0x49   : > { %vm272_vm3 = vmor %vm270_vm1, %vm271_vm2 }
  0x4a   : > { %v267_v2 = vsub.f32 1.0, %v266_v62 }
  0x4c   : > { %v268_v4 = vmul.f32 %v677_v60, %v267_v2  ;;  %v579_v2 = vld [vmem:[%s952_s6 + $0x6] sm:$0x1] }
  0x4e   : > { %v269_v6 = vadd.f32 %v677_v60, %v268_v4 }
  0x50   : > { %v273_v7 = vsel %vm272_vm3, %v677_v60, %v269_v6 }
  0x51   : > { %v278_v8 = vsel %vm275_vm4, %v277_v5, %v273_v7 }
  0x52   : > { %v279_v9 = vmul.f32 %v669_v23, %v278_v8  ;;  %v315_v10 = vmul.f32 %v671_v26, %v278_v8  ;;  %v352_v11 = vmul.f32 %v673_v30, %v278_v8  ;;  %v389_v12 = vmul.f32 %v675_v34, %v278_v8 }
  0x54   : > { %v282_v13 = vmul.f32 %v967_v16, %v279_v9  ;;  %v295_v14 = vsel %vm283_vm0, %v279_v9, 0.0  ;;  %v320_v15 = vmul.f32 %v972_v18, %v315_v10  ;;  %v332_v17 = vsel %vm283_vm0, %v315_v10, 0.0  ;;  %v577_v10 = vld [vmem:[%s952_s6 + $0x2] sm:$0x1] }
  0x55   : > { %v296_v19 = vrot.slane %v295_v14, 4  ;;  %v333_v20 = vrot.slane %v332_v17, 4  ;;  %v357_v21 = vmul.f32 %v977_v22, %v352_v11  ;;  %v369_v24 = vsel %vm283_vm0, %v352_v11, 0.0 }
  0x56   : > { %v284_v25 = vsel %vm283_vm0, %v282_v13, 0.0  ;;  %v321_v23 = vsel %vm283_vm0, %v320_v15, 0.0  ;;  %v370_v26 = vrot.slane %v369_v24, 4  ;;  %v394_v27 = vmul.f32 %v982_v29, %v389_v12 }
  0x57   : > { %v285_v16 = vrot.slane %v284_v25, 4  ;;  %v297_v28 = vadd.f32 %v296_v19, %v295_v14  ;;  %v322_v30 = vrot.slane %v321_v23, 4  ;;  %v334_v31 = vadd.f32 %v333_v20, %v332_v17  ;;  %v584_v19 = vld [vmem:[%s952_s6 + $0x3] sm:$0x1]  ;;  %v586_v20 = vld [vmem:[%s952_s6 + $0x7] sm:$0x1] }
  0x58   : > { %v358_v18 = vsel %vm283_vm0, %v357_v21, 0.0  ;;  %v371_v32 = vadd.f32 %v370_v26, %v369_v24  ;;  %v395_v33 = vsel %vm283_vm0, %v394_v27, 0.0  ;;  %v406_v22 = vsel %vm283_vm0, %v389_v12, 0.0 }
  0x59   : > { %v286_v34 = vadd.f32 %v285_v16, %v284_v25  ;;  %v298_v35 = vrot.slane %v297_v28, 2  ;;  %v323_v36 = vadd.f32 %v322_v30, %v321_v23  ;;  %v335_v37 = vrot.slane %v334_v31, 2 }
  0x5a   : > { %v359_v38 = vrot.slane %v358_v18, 4  ;;  %v372_v39 = vrot.slane %v371_v32, 2  ;;  %v396_v29 = vrot.slane %v395_v33, 4  ;;  %v407_v40 = vrot.slane %v406_v22, 4 }
  0x5b   : > { %v287_v41 = vrot.slane %v286_v34, 2  ;;  %v299_v42 = vadd.f32 %v298_v35, %v297_v28  ;;  %v324_v43 = vrot.slane %v323_v36, 2  ;;  %v336_v44 = vadd.f32 %v335_v37, %v334_v31 }
  0x5c   : > { %v360_v45 = vadd.f32 %v359_v38, %v358_v18  ;;  %v373_v46 = vadd.f32 %v372_v39, %v371_v32  ;;  %v397_v47 = vadd.f32 %v396_v29, %v395_v33  ;;  %v408_v48 = vadd.f32 %v407_v40, %v406_v22 }
  0x5d   : > { %v288_v49 = vadd.f32 %v287_v41, %v286_v34  ;;  %v300_v51 = vrot.slane %v299_v42, 1  ;;  %v325_v52 = vadd.f32 %v324_v43, %v323_v36  ;;  %v337_v53 = vrot.slane %v336_v44, 1 }
  0x5e   : > { %v361_v55 = vrot.slane %v360_v45, 2  ;;  %v374_v56 = vrot.slane %v373_v46, 1  ;;  %v398_v57 = vrot.slane %v397_v47, 2  ;;  %v409_v58 = vrot.slane %v408_v48, 2 }
  0x5f   : > { %v289_v59 = vrot.slane %v288_v49, 1  ;;  %v301_v60 = vadd.f32 %v300_v51, %v299_v42  ;;  %v326_v61 = vrot.slane %v325_v52, 1  ;;  %v338_v62 = vadd.f32 %v337_v53, %v336_v44 }
  0x60   : > { %v362_v1 = vadd.f32 %v361_v55, %v360_v45  ;;  %v375_v3 = vadd.f32 %v374_v56, %v373_v46  ;;  %v399_v4 = vadd.f32 %v398_v57, %v397_v47  ;;  %v410_v5 = vadd.f32 %v409_v58, %v408_v48 }
  0x61   : > { %v290_v6 = vadd.f32 %v289_v59, %v288_v49  ;;  %v302_v7 = vadd.f32 %v565_v50, %v301_v60  ;;  %v327_v8 = vadd.f32 %v326_v61, %v325_v52  ;;  %v339_v9 = vadd.f32 %v572_v54, %v338_v62 }
  0x62   : > { %v363_v11 = vrot.slane %v362_v1, 1  ;;  %v400_v12 = vrot.slane %v399_v4, 1  ;;  %v411_v13 = vrot.slane %v410_v5, 1  ;;  %v376_v17 = vadd.f32 %v579_v2, %v375_v3 }
  0x63   : > { %v291_v14 = vadd.f32 %v290_v6, %v281_v63  ;;  %566 = vst [vmem:[%s952_s6 + $0x4] sm:$0x1] %v302_v7  ;;  %v328_v15 = vadd.f32 %v570_v0, %v327_v8 }
  0x64   : > { %573 = vst [vmem:[%s952_s6 + $0x5] sm:$0x1] %v339_v9  ;;  %v364_v21 = vadd.f32 %v363_v11, %v362_v1  ;;  %v401_v24 = vadd.f32 %v400_v12, %v399_v4  ;;  %v412_v25 = vadd.f32 %v411_v13, %v410_v5 }
  0x65   : > { %292 = vst [vmem:[%s952_s6] sm:$0x1] %v291_v14 }
  0x66   : > { %571 = vst [vmem:[%s952_s6 + $0x1] sm:$0x1] %v328_v15  ;;  %v365_v23 = vadd.f32 %v577_v10, %v364_v21  ;;  %v402_v26 = vadd.f32 %v584_v19, %v401_v24  ;;  %v413_v27 = vadd.f32 %v586_v20, %v412_v25 }
  0x67   : > { %580 = vst [vmem:[%s952_s6 + $0x6] sm:$0x1] %v376_v17 }
  0x68   : > { %578 = vst [vmem:[%s952_s6 + $0x2] sm:$0x1] %v365_v23 }
  0x69   : > { %585 = vst [vmem:[%s952_s6 + $0x3] sm:$0x1] %v402_v26 }
  0x6a   : > { %587 = vst [vmem:[%s952_s6 + $0x7] sm:$0x1] %v413_v27 }
  0x6b   : > { %765 = shalt.err (!%p762_p13)
}
  0x6c   : > { %s829_s3 = smov 16   ;;  %s830_s25 = smov 1  }
  0x6d   : > { %600 = dma.vmem_to_hbm [thread:$0]  (%p897_p9), %s439_s16, 192, %s441_s18, %s427_s20, %s829_s3, %s829_s3, %s830_s25  }
  0x6e PF: > { %s455_s26 = sand.u32 1, %s804_s9   ;;  %p610_p0 = pnand %p552_p12, %p904_p11 }
  0x6f   : > { %s456_s27 = scalar_lea.sflag [#allocation4], %s455_s26 }
  0x70   : > { %p611_p1 = pneg %p610_p0 }
  0x72   : > { %799 = dma.done.wait (%p611_p1), %s456_s27, 192  }
  0x73   : > { %801 = vsyncadd (%p611_p1), %s456_s27, 4294967104  ;;  %s21_s14 = sadd.s32 1, %s824_s14   ;;  %s1069_s9 = smov %s808_s10 }
  0x74   : > { %p18_p2 = scmp.ge.s32.totalorder %s21_s14, 4   ;;  %s1070_s10 = smov %s812_s11 }
  0x75   : > { %s1071_s11 = smov %s902_s23  ;;  %s1072_s12 = smov %s820_s13 }
  0x76   : > { %s1073_s13 = smov %s1075_s17  ;;  %20 = sbr.rel (!%p18_p2) target bundleno = 8 (0x8), region = 107 }
  0x7b   :  { %462 = vsyncpa [#allocation3], 1 }
  0x7c   :  { %464 = vsyncpa [#allocation3 + $0x1], 1 }
  0x7d   :  { %465 = vsyncpa [#allocation6], 1 }
  0x7e   :  { %467 = vsyncpa [#allocation6 + $0x1], 1 }
  0x7f   :  { %468 = vsyncpa [#allocation4], 1 }
  0x80   :  { %470 = vsyncpa [#allocation4 + $0x1], 1 }

</bundles_post_ra>
